<compile_context>
chip_gen: v7x
topology: tpu7x:2x2x1
jax: 0.10.0
libtpu: 0.0.40
codegen_flags: <defaults>
</compile_context>

<pallas_src>
import functools

import jax
import jax.numpy as jnp
from jax.experimental import pallas as pl
from jax.experimental.pallas import tpu as pltpu


def _round_up(n, m):
    return (n + m - 1) // m * m


def _nrde_mlp_kernel(num_layers, compute_dtype, t_ref, h_ref, x_ref, *refs):
    """One batch tile: concat(h, x[:, t]) -> MLP -> [TB, Op] (padded flat out).

    t_ref : SMEM (1,) int32       time-bucket index (scalar prefetch)
    h_ref : VMEM [TB, Dp] f32     hidden-state tile (D zero-padded to Dp)
    x_ref : VMEM [TB, S]  f32     control-path values for this batch tile
    refs  : w1h [Dp,Hp], w1x [1,Hp], b1 [1,Hp],
            (num_layers-1) x ( w_mid [Hp,Hp], b_mid [1,Hp] ),
            w_out [Hp,Op], b_out [1,Op],
            out_ref [TB, Op]
    Weights are stored in `compute_dtype` (bf16 by default); biases are f32.
    """
    out_ref = refs[-1]
    w = refs[:-1]
    cd = compute_dtype

    t_idx = t_ref[0]
    h = h_ref[...]                                    # [TB, Dp] f32

    # Select x[:, t_idx] with a masked lane reduction (no dynamic lane slice).
    x_all = x_ref[...]                                # [TB, S] f32
    lane = jax.lax.broadcasted_iota(jnp.int32, x_all.shape, 1)
    xt = jnp.sum(jnp.where(lane == t_idx, x_all, 0.0),
                 axis=1, keepdims=True)               # [TB, 1] f32

    # Layer 1: concat([h, x_t], 1) @ W1 + b1, with W1 split row-wise into the
    # h-part (MXU matmul) and the x-part (VPU outer product). Matches torch.
    w1h, w1x, b1 = w[0][...], w[1][...], w[2][...]
    z = (jnp.dot(h.astype(cd), w1h, preferred_element_type=jnp.float32)
         + xt * w1x.astype(jnp.float32) + b1)         # [TB, Hp] f32

    idx = 3
    for _ in range(num_layers - 1):   # Python-unrolled: full LLO visibility
        w_mid, b_mid = w[idx][...], w[idx + 1][...]
        idx += 2
        z = jnp.maximum(z, 0.0)                                      # ReLU (VPU)
        z = jnp.dot(z.astype(cd), w_mid,
                    preferred_element_type=jnp.float32) + b_mid

    z = jnp.tanh(z)                                                  # EUP, f32

    w_out, b_out = w[idx][...], w[idx + 1][...]
    out = jnp.dot(z.astype(cd), w_out,
                  preferred_element_type=jnp.float32) + b_out        # [TB, Op]
    out_ref[...] = out.astype(out_ref.dtype)


def prepare_nrde_params(params, *, input_dim, logsig_dim, num_layers,
                        hidden_dim, compute_dtype=jnp.bfloat16):
    """Zero-pad to TPU-friendly shapes and cast weights to `compute_dtype`.

    Padding is exact: extra rows/cols are zero, so padded hidden units stay 0
    through ReLU/tanh and padded output columns are sliced off by the caller.
    Call once; reuse the result for every solver step.
    """
    d_p = _round_up(input_dim, 8)
    h_p = _round_up(hidden_dim, 128)
    o_p = _round_up(input_dim * logsig_dim, 128)
    cd = compute_dtype

    def pad2(a, rows, cols):
        return jnp.pad(a, ((0, rows - a.shape[0]), (0, cols - a.shape[1])))

    prep = {
        "w1h": pad2(params["w1h"], d_p, h_p).astype(cd),
        "w1x": pad2(params["w1x"], 1, h_p).astype(cd),
        "b1": pad2(params["b1"], 1, h_p).astype(jnp.float32),
    }
    for i in range(num_layers - 1):
        prep[f"w_mid{i}"] = pad2(params[f"w_mid{i}"], h_p, h_p).astype(cd)
        prep[f"b_mid{i}"] = pad2(params[f"b_mid{i}"], 1, h_p).astype(jnp.float32)
    prep["w_out"] = pad2(params["w_out"], h_p, o_p).astype(cd)
    prep["b_out"] = pad2(params["b_out"], 1, o_p).astype(jnp.float32)
    return prep


def nrde_func_forward(h, t, x, prepared, *, input_dim, logsig_dim, num_layers,
                      hidden_dim, compute_dtype=jnp.bfloat16, batch_tile=128):
    """Pallas-backed forward of _NRDEFunc.

    h : [B, D] f32,  x : [B, S, 1] f32,  t : python float or traced scalar.
    `prepared` comes from prepare_nrde_params (padded / cast weights).
    Returns [B, D, L] f32.
    """
    # TODO(synk): num_layers == 0 plain-Linear branch of the module is not implemented.
    assert num_layers >= 1
    B, D = h.shape
    S = x.shape[1]
    assert D == input_dim

    d_p = _round_up(D, 8)
    h_p = _round_up(hidden_dim, 128)
    o_p = _round_up(D * logsig_dim, 128)
    tb = batch_tile                 # >=128 fills the MXU M dim (256 on v6e/v7x)
    b_p = _round_up(B, tb)
    n_tiles = b_p // tb

    # Time-bucket index. The PyTorch module truncates (int(t / 0.1)); keep that
    # for concrete t. For traced t (jitted solver), truncate in f32 so the call
    # does not recompile per step. Clamp guards the in-kernel VMEM read.
    if isinstance(t, (int, float)):
        ti = int(t / 0.1)
    else:
        ti = (jnp.asarray(t, jnp.float32) / jnp.float32(0.1)).astype(jnp.int32)
    t_idx = jnp.clip(jnp.asarray(ti, jnp.int32).reshape(1), 0, S - 1)

    # Pad activations to the tiled shapes (padded rows are sliced off below).
    h_pad = jnp.pad(h.astype(jnp.float32), ((0, b_p - B), (0, d_p - D)))
    x2d = jnp.pad(x[..., 0].astype(jnp.float32), ((0, b_p - B), (0, 0)))  # [b_p, S]

    weight_list = [prepared["w1h"], prepared["w1x"], prepared["b1"]]
    for i in range(num_layers - 1):
        weight_list += [prepared[f"w_mid{i}"], prepared[f"b_mid{i}"]]
    weight_list += [prepared["w_out"], prepared["b_out"]]

    # Activation tiles follow the batch grid; weights use constant index_maps
    # so they are DMA'd once and stay resident in VMEM for all grid steps.
    act_in_specs = [
        pl.BlockSpec((tb, d_p), lambda i, t_ref: (i, 0)),
        pl.BlockSpec((tb, S), lambda i, t_ref: (i, 0)),
    ]
    w_specs = [pl.BlockSpec(wt.shape, lambda i, t_ref: (0, 0))
               for wt in weight_list]
    out_spec = pl.BlockSpec((tb, o_p), lambda i, t_ref: (i, 0))

    # Explicit VMEM budget; never below the default scoped limit, capped at
    # v7x's 64 MiB physical VMEM.
    w_bytes = sum(wt.size * wt.dtype.itemsize for wt in weight_list)
    act_bytes = 2 * tb * (d_p + S + o_p) * 4          # double-buffered tiles
    work_bytes = 8 * tb * max(h_p, o_p) * 4           # intermediates headroom
    vmem_limit = int(min(max(2 * w_bytes + act_bytes + work_bytes + (2 << 20),
                             32 << 20), 64 << 20))

    out_flat = pl.pallas_call(
        functools.partial(_nrde_mlp_kernel, num_layers, compute_dtype),
        out_shape=jax.ShapeDtypeStruct((b_p, o_p), jnp.float32),
        grid_spec=pltpu.PrefetchScalarGridSpec(
            num_scalar_prefetch=1,
            grid=(n_tiles,),
            in_specs=act_in_specs + w_specs,
            out_specs=out_spec,
        ),
        compiler_params=pltpu.CompilerParams(
            dimension_semantics=("parallel",),        # megacore on v7x
            vmem_limit_bytes=vmem_limit,
        ),
    )(t_idx, h_pad, x2d, *weight_list)

    return out_flat[:B, :D * logsig_dim].reshape(B, D, logsig_dim)


def init_nrde_params(key, *, input_dim, logsig_dim, num_layers, hidden_dim):
    """Deterministic synthetic parameters (torch-Linear-like uniform init)."""
    params = {}

    def linear(key, fan_in, fan_out):
        kw, kb = jax.random.split(key)
        bound = 1.0 / jnp.sqrt(jnp.float32(fan_in))
        wt = jax.random.uniform(kw, (fan_in, fan_out), jnp.float32, -bound, bound)
        bs = jax.random.uniform(kb, (1, fan_out), jnp.float32, -bound, bound)
        return wt, bs

    keys = jax.random.split(key, num_layers + 1)
    w1, b1 = linear(keys[0], input_dim + 1, hidden_dim)
    params["w1h"] = w1[:input_dim, :]       # [D, H]
    params["w1x"] = w1[input_dim:, :]       # [1, H]
    params["b1"] = b1                       # [1, H]
    for i in range(num_layers - 1):
        wt, bs = linear(keys[1 + i], hidden_dim, hidden_dim)
        params[f"w_mid{i}"] = wt
        params[f"b_mid{i}"] = bs
    wt, bs = linear(keys[-1], hidden_dim, input_dim * logsig_dim)
    params["w_out"] = wt
    params["b_out"] = bs
    return params


def nrde_func_reference(h, t, x, params, *, input_dim, logsig_dim, num_layers,
                        compute_dtype=jnp.float32):
    """Pure-JAX mirror of the PyTorch module. With compute_dtype=bfloat16 the
    dot inputs are cast exactly like the kernel (f32 accumulation), giving a
    tight comparison for the mixed-precision path."""
    cd = compute_dtype

    def mm(a, wt):
        return jnp.dot(a.astype(cd), wt.astype(cd),
                       preferred_element_type=jnp.float32)

    t_idx = int(t / 0.1)
    xt = x[:, t_idx, :]
    z = (mm(h, params["w1h"])
         + xt * params["w1x"].astype(cd).astype(jnp.float32)
         + params["b1"])
    for i in range(num_layers - 1):
        z = jnp.maximum(z, 0.0)
        z = mm(z, params[f"w_mid{i}"]) + params[f"b_mid{i}"]
    z = jnp.tanh(z)
    out = mm(z, params["w_out"]) + params["b_out"]
    return out.reshape(-1, input_dim, logsig_dim)


if __name__ == "__main__":
    # Small shapes consistent with the module's forward.
    B = 2            # batch
    D = 4            # input_dim (hidden-state size of the CDE)
    L = 8            # logsig_dim
    H = 32           # hidden_dim of the MLP
    NUM_LAYERS = 2
    S = 8            # number of time buckets in x
    T = 0.3          # int(0.3 / 0.1) == 2 (Python truncation; matches torch)

    key = jax.random.PRNGKey(0)
    k_h, k_x, k_p = jax.random.split(key, 3)
    h = jax.random.normal(k_h, (B, D), jnp.float32)
    x = jax.random.normal(k_x, (B, S, 1), jnp.float32)
    params = init_nrde_params(k_p, input_dim=D, logsig_dim=L,
                              num_layers=NUM_LAYERS, hidden_dim=H)

    common = dict(input_dim=D, logsig_dim=L, num_layers=NUM_LAYERS,
                  hidden_dim=H)

    # 1) Full-f32 path: semantic check against the PyTorch mirror.
    prep_f32 = prepare_nrde_params(params, compute_dtype=jnp.float32, **common)
    out_f32 = nrde_func_forward(h, T, x, prep_f32,
                                compute_dtype=jnp.float32, **common)
    out_f32 = jax.block_until_ready(out_f32)
    ref_f32 = nrde_func_reference(h, T, x, params, input_dim=D, logsig_dim=L,
                                  num_layers=NUM_LAYERS,
                                  compute_dtype=jnp.float32)
    assert out_f32.shape == (B, D, L), out_f32.shape
    assert jnp.allclose(out_f32, ref_f32, atol=1e-4, rtol=1e-4), \
        float(jnp.max(jnp.abs(out_f32 - ref_f32)))

    # 2) bf16-weight path (recommended on v6e/v7x): tight check against a
    #    reference with identical bf16 dot boundaries (f32 accumulation).
    prep_bf = prepare_nrde_params(params, compute_dtype=jnp.bfloat16, **common)
    out_bf = nrde_func_forward(h, T, x, prep_bf,
                               compute_dtype=jnp.bfloat16, **common)
    out_bf = jax.block_until_ready(out_bf)
    ref_bf = nrde_func_reference(h, T, x, params, input_dim=D, logsig_dim=L,
                                 num_layers=NUM_LAYERS,
                                 compute_dtype=jnp.bfloat16)
    assert out_bf.shape == (B, D, L), out_bf.shape
    assert jnp.allclose(out_bf, ref_bf, atol=2e-3, rtol=2e-3), \
        float(jnp.max(jnp.abs(out_bf - ref_bf)))
    # Sanity: bf16 path stays close to the exact f32 module semantics.
    assert jnp.allclose(out_bf, ref_f32, atol=5e-2, rtol=5e-2), \
        float(jnp.max(jnp.abs(out_bf - ref_f32)))

    print("KERNEL_OK")
</pallas_src>

<mosaic_0001>
module attributes {stable_mosaic.version = 11 : i64} {
  func.func @_nrde_mlp_kernel(%arg0: i32, %arg1: memref<1xi32, #tpu.memory_space<smem>>, %arg2: memref<128x8xf32, #tpu.memory_space<vmem>>, %arg3: memref<128x8xf32, #tpu.memory_space<vmem>>, %arg4: memref<8x128xf32, #tpu.memory_space<vmem>>, %arg5: memref<1x128xf32, #tpu.memory_space<vmem>>, %arg6: memref<1x128xf32, #tpu.memory_space<vmem>>, %arg7: memref<128x128xf32, #tpu.memory_space<vmem>>, %arg8: memref<1x128xf32, #tpu.memory_space<vmem>>, %arg9: memref<128x128xf32, #tpu.memory_space<vmem>>, %arg10: memref<1x128xf32, #tpu.memory_space<vmem>>, %arg11: memref<128x128xf32, #tpu.memory_space<vmem>>) attributes {dimension_semantics = [#tpu.dimension_semantics<parallel>], iteration_bounds = array<i64: 1>, scalar_prefetch = 1 : i64, scratch_operands = 0 : i64, tpu.core_type = #tpu.core_type<tc>, window_params = [{transform_indices = @transform_0, window_bounds = array<i64: 128, 8>}, {transform_indices = @transform_1, window_bounds = array<i64: 128, 8>}, {pipeline_mode = #tpu.pipeline_mode<synchronous>, transform_indices = @transform_2, window_bounds = array<i64: 8, 128>}, {pipeline_mode = #tpu.pipeline_mode<synchronous>, transform_indices = @transform_3, window_bounds = array<i64: 1, 128>}, {pipeline_mode = #tpu.pipeline_mode<synchronous>, transform_indices = @transform_4, window_bounds = array<i64: 1, 128>}, {pipeline_mode = #tpu.pipeline_mode<synchronous>, transform_indices = @transform_5, window_bounds = array<i64: 128, 128>}, {pipeline_mode = #tpu.pipeline_mode<synchronous>, transform_indices = @transform_6, window_bounds = array<i64: 1, 128>}, {pipeline_mode = #tpu.pipeline_mode<synchronous>, transform_indices = @transform_7, window_bounds = array<i64: 128, 128>}, {pipeline_mode = #tpu.pipeline_mode<synchronous>, transform_indices = @transform_8, window_bounds = array<i64: 1, 128>}, {transform_indices = @transform_9, window_bounds = array<i64: 128, 128>}]} {
    %c0 = arith.constant 0 : index
    %0 = memref.load %arg1[%c0] : memref<1xi32, #tpu.memory_space<smem>>
    %c0_0 = arith.constant 0 : index
    %c0_1 = arith.constant 0 : index
    %1 = vector.load %arg2[%c0_0, %c0_1] : memref<128x8xf32, #tpu.memory_space<vmem>>, vector<128x8xf32>
    %c0_2 = arith.constant 0 : index
    %c0_3 = arith.constant 0 : index
    %2 = vector.load %arg3[%c0_2, %c0_3] : memref<128x8xf32, #tpu.memory_space<vmem>>, vector<128x8xf32>
    %3 = tpu.iota {dimensions = array<i32: 1>} : vector<128x8xi32>
    %4 = vector.broadcast %0 : i32 to vector<128x8xi32>
    %5 = arith.cmpi eq, %3, %4 : vector<128x8xi32>
    %cst = arith.constant 0.000000e+00 : f32
    %6 = vector.broadcast %cst : f32 to vector<128x8xf32>
    %7 = arith.select %5, %2, %6 : vector<128x8xi1>, vector<128x8xf32>
    %cst_4 = arith.constant dense<0.000000e+00> : vector<128xf32>
    %8 = vector.multi_reduction <add>, %7, %cst_4 [1] : vector<128x8xf32> to vector<128xf32>
    %9 = vector.shape_cast %8 : vector<128xf32> to vector<128x1xf32>
    %c0_5 = arith.constant 0 : index
    %c0_6 = arith.constant 0 : index
    %10 = vector.load %arg4[%c0_5, %c0_6] : memref<8x128xf32, #tpu.memory_space<vmem>>, vector<8x128xf32>
    %c0_7 = arith.constant 0 : index
    %c0_8 = arith.constant 0 : index
    %11 = vector.load %arg5[%c0_7, %c0_8] : memref<1x128xf32, #tpu.memory_space<vmem>>, vector<1x128xf32>
    %c0_9 = arith.constant 0 : index
    %c0_10 = arith.constant 0 : index
    %12 = vector.load %arg6[%c0_9, %c0_10] : memref<1x128xf32, #tpu.memory_space<vmem>>, vector<1x128xf32>
    %cst_11 = arith.constant dense<0.000000e+00> : vector<128x128xf32>
    %13 = tpu.matmul %1, %10, %cst_11 {dimension_numbers = #tpu.dot_dimension_numbers<[1], [0], [0], [1], [0, 0, 1, 1], [], []>} : vector<128x8xf32>, vector<8x128xf32>, vector<128x128xf32> -> vector<128x128xf32>
    %14 = vector.broadcast %9 : vector<128x1xf32> to vector<128x128xf32>
    %15 = vector.broadcast %11 : vector<1x128xf32> to vector<128x128xf32>
    %16 = arith.mulf %14, %15 : vector<128x128xf32>
    %17 = arith.addf %13, %16 : vector<128x128xf32>
    %18 = vector.broadcast %12 : vector<1x128xf32> to vector<128x128xf32>
    %19 = arith.addf %17, %18 : vector<128x128xf32>
    %c0_12 = arith.constant 0 : index
    %c0_13 = arith.constant 0 : index
    %20 = vector.load %arg7[%c0_12, %c0_13] : memref<128x128xf32, #tpu.memory_space<vmem>>, vector<128x128xf32>
    %c0_14 = arith.constant 0 : index
    %c0_15 = arith.constant 0 : index
    %21 = vector.load %arg8[%c0_14, %c0_15] : memref<1x128xf32, #tpu.memory_space<vmem>>, vector<1x128xf32>
    %cst_16 = arith.constant 0.000000e+00 : f32
    %22 = vector.broadcast %cst_16 : f32 to vector<128x128xf32>
    %23 = arith.maximumf %19, %22 : vector<128x128xf32>
    %cst_17 = arith.constant dense<0.000000e+00> : vector<128x128xf32>
    %24 = tpu.matmul %23, %20, %cst_17 {dimension_numbers = #tpu.dot_dimension_numbers<[1], [0], [0], [1], [0, 0, 1, 1], [], []>} : vector<128x128xf32>, vector<128x128xf32>, vector<128x128xf32> -> vector<128x128xf32>
    %25 = vector.broadcast %21 : vector<1x128xf32> to vector<128x128xf32>
    %26 = arith.addf %24, %25 : vector<128x128xf32>
    %27 = math.tanh %26 : vector<128x128xf32>
    %c0_18 = arith.constant 0 : index
    %c0_19 = arith.constant 0 : index
    %28 = vector.load %arg9[%c0_18, %c0_19] : memref<128x128xf32, #tpu.memory_space<vmem>>, vector<128x128xf32>
    %c0_20 = arith.constant 0 : index
    %c0_21 = arith.constant 0 : index
    %29 = vector.load %arg10[%c0_20, %c0_21] : memref<1x128xf32, #tpu.memory_space<vmem>>, vector<1x128xf32>
    %cst_22 = arith.constant dense<0.000000e+00> : vector<128x128xf32>
    %30 = tpu.matmul %27, %28, %cst_22 {dimension_numbers = #tpu.dot_dimension_numbers<[1], [0], [0], [1], [0, 0, 1, 1], [], []>} : vector<128x128xf32>, vector<128x128xf32>, vector<128x128xf32> -> vector<128x128xf32>
    %31 = vector.broadcast %29 : vector<1x128xf32> to vector<128x128xf32>
    %32 = arith.addf %30, %31 : vector<128x128xf32>
    %c0_23 = arith.constant 0 : index
    %c0_24 = arith.constant 0 : index
    %33 = vector.load %arg11[%c0_23, %c0_24] : memref<128x128xf32, #tpu.memory_space<vmem>>, vector<128x128xf32>
    tpu.vector_store %arg11[%c0_23, %c0_24], %32 {strides = array<i32>} : memref<128x128xf32, #tpu.memory_space<vmem>>, vector<128x128xf32>,
    return
  }
  func.func @transform_0(%arg0: i32, %arg1: memref<1xi32, #tpu.memory_space<smem>>) -> (i32, i32) {
    %c0_i32 = arith.constant 0 : i32
    %c0_i32_0 = arith.constant 0 : i32
    return %arg0, %c0_i32 : i32, i32
  }
  func.func @transform_1(%arg0: i32, %arg1: memref<1xi32, #tpu.memory_space<smem>>) -> (i32, i32) {
    %c0_i32 = arith.constant 0 : i32
    %c0_i32_0 = arith.constant 0 : i32
    return %arg0, %c0_i32 : i32, i32
  }
  func.func @transform_2(%arg0: i32, %arg1: memref<1xi32, #tpu.memory_space<smem>>) -> (i32, i32) {
    %c0_i32 = arith.constant 0 : i32
    %c0_i32_0 = arith.constant 0 : i32
    %c0_i32_1 = arith.constant 0 : i32
    return %c0_i32, %c0_i32_0 : i32, i32
  }
  func.func @transform_3(%arg0: i32, %arg1: memref<1xi32, #tpu.memory_space<smem>>) -> (i32, i32) {
    %c0_i32 = arith.constant 0 : i32
    %c0_i32_0 = arith.constant 0 : i32
    %c0_i32_1 = arith.constant 0 : i32
    return %c0_i32, %c0_i32_0 : i32, i32
  }
  func.func @transform_4(%arg0: i32, %arg1: memref<1xi32, #tpu.memory_space<smem>>) -> (i32, i32) {
    %c0_i32 = arith.constant 0 : i32
    %c0_i32_0 = arith.constant 0 : i32
    %c0_i32_1 = arith.constant 0 : i32
    return %c0_i32, %c0_i32_0 : i32, i32
  }
  func.func @transform_5(%arg0: i32, %arg1: memref<1xi32, #tpu.memory_space<smem>>) -> (i32, i32) {
    %c0_i32 = arith.constant 0 : i32
    %c0_i32_0 = arith.constant 0 : i32
    %c0_i32_1 = arith.constant 0 : i32
    return %c0_i32, %c0_i32_0 : i32, i32
  }
  func.func @transform_6(%arg0: i32, %arg1: memref<1xi32, #tpu.memory_space<smem>>) -> (i32, i32) {
    %c0_i32 = arith.constant 0 : i32
    %c0_i32_0 = arith.constant 0 : i32
    %c0_i32_1 = arith.constant 0 : i32
    return %c0_i32, %c0_i32_0 : i32, i32
  }
  func.func @transform_7(%arg0: i32, %arg1: memref<1xi32, #tpu.memory_space<smem>>) -> (i32, i32) {
    %c0_i32 = arith.constant 0 : i32
    %c0_i32_0 = arith.constant 0 : i32
    %c0_i32_1 = arith.constant 0 : i32
    return %c0_i32, %c0_i32_0 : i32, i32
  }
  func.func @transform_8(%arg0: i32, %arg1: memref<1xi32, #tpu.memory_space<smem>>) -> (i32, i32) {
    %c0_i32 = arith.constant 0 : i32
    %c0_i32_0 = arith.constant 0 : i32
    %c0_i32_1 = arith.constant 0 : i32
    return %c0_i32, %c0_i32_0 : i32, i32
  }
  func.func @transform_9(%arg0: i32, %arg1: memref<1xi32, #tpu.memory_space<smem>>) -> (i32, i32) {
    %c0_i32 = arith.constant 0 : i32
    %c0_i32_0 = arith.constant 0 : i32
    return %arg0, %c0_i32 : i32, i32
  }
}

</mosaic_0001>

<bundles_post_ra>
// kernel: tpu_custom_call.1
= control target key start
LH: loop header
LB: loop body
LE: loop exit
PB: predicated region body
PF: predicated region fallthrough
CT: control target
= control target key end

     0   :  { %vm88_vm0 = vcmask 64512   ;;  %v68_v3 = vlaneseq  ;;  %s1541_s0 = inlined_call_operand.<no memory space> [shape: s32[1], index: 0, kind: input, shape index: {}]   ;;  %s1542_s1 = inlined_call_operand.vmem [shape: f32[128,8], index: 1, kind: input, shape index: {}]   ;;  %s1543_s2 = inlined_call_operand.vmem [shape: f32[128,8], index: 2, kind: input, shape index: {}]   ;;  %s1544_s3 = inlined_call_operand.vmem [shape: f32[8,128], index: 3, kind: input, shape index: {}]   ;;  %s1545_s4 = inlined_call_operand.vmem [shape: f32[1,128], index: 4, kind: input, shape index: {}]   ;;  %s1546_s5 = inlined_call_operand.vmem [shape: f32[1,128], index: 5, kind: input, shape index: {}]   ;;  %s1547_s6 = inlined_call_operand.vmem [shape: f32[128,128], index: 6, kind: input, shape index: {}]   ;;  %s1548_s7 = inlined_call_operand.vmem [shape: f32[1,128], index: 7, kind: input, shape index: {}]   ;;  %s1549_s8 = inlined_call_operand.vmem [shape: f32[128,128], index: 8, kind: input, shape index: {}]   ;;  %s1550_s9 = inlined_call_operand.vmem [shape: f32[1,128], index: 9, kind: input, shape index: {}]   ;;  %s1551_s10 = inlined_call_operand.hbm [shape: f32[128,128], index: 10, kind: output, shape index: {}]  }
   0x1   :  { %v137_v0 = vld [vmem:[%s1544_s3] sm:$0xff]  ;;  %v37_v2 = vld [vmem:[%s1542_s1 + $0x8] sm:$0xff]  ;;  %v38_v4 = vld [vmem:[%s1542_s1 + $0x10] sm:$0xff]  ;;  %v70_v5 = vstv %s1541_s0 }
   0x2   :  { %v36_v1 = vld [vmem:[%s1542_s1] sm:$0xff]  ;;  %878 = vmatprep.subr.mxu0 %v137_v0  ;;  %v69_v6 = vand.u32 127, %v68_v3  ;;  %v39_v7 = vld [vmem:[%s1542_s1 + $0x18] sm:$0xff]  ;;  %v54_v12 = vld [vmem:[%s1543_s2 + $0x10] sm:$0xff] }
   0x3   :  { %880 = vmatprep.mubr.msk.f32.mxu0 %vm88_vm0, %v36_v1  ;;  %879 = vmatpush3.msra.mxu0 %v137_v0  ;;  %v40_v9 = vld [vmem:[%s1542_s1 + $0x20] sm:$0xff]  ;;  %v53_v13 = vld [vmem:[%s1543_s2 + $0x8] sm:$0xff]  ;;  %v55_v14 = vld [vmem:[%s1543_s2 + $0x18] sm:$0xff] }
   0x4   :  { %881 = vmatmul.mubr.msk.f32.vlgmr.msra.gmra.mrb[0].mxu0 %vm88_vm0, %v37_v2  ;;  %vm1218_vm1 = vcmp.eq.s32.totalorder %v69_v6, %v70_v5  ;;  %v52_v10 = vld [vmem:[%s1543_s2] sm:$0xff]  ;;  %v41_v20 = vld [vmem:[%s1542_s1 + $0x28] sm:$0xff]  ;;  %v42_v23 = vld [vmem:[%s1542_s1 + $0x30] sm:$0xff] }
   0x5   :  { %883 = vmatprep.mubr.msk.f32.mxu0 %vm88_vm0, %v38_v4  ;;  %v72_v11 = vsel %vm1218_vm1, %v52_v10, 0.0  ;;  %v74_v16 = vsel %vm1218_vm1, %v54_v12, 0.0  ;;  %v73_v17 = vsel %vm1218_vm1, %v53_v13, 0.0  ;;  %v75_v18 = vsel %vm1218_vm1, %v55_v14, 0.0  ;;  %v56_v19 = vld [vmem:[%s1543_s2 + $0x20] sm:$0xff]  ;;  %v57_v22 = vld [vmem:[%s1543_s2 + $0x28] sm:$0xff] }
   0x6   :  { %v89_v15 = vsel %vm88_vm0, %v72_v11, 0.0  ;;  %v95_v21 = vsel %vm88_vm0, %v74_v16, 0.0  ;;  %v92_v24 = vsel %vm88_vm0, %v73_v17, 0.0  ;;  %v98_v25 = vsel %vm88_vm0, %v75_v18, 0.0  ;;  %v58_v28 = vld [vmem:[%s1543_s2 + $0x30] sm:$0xff]  ;;  %v43_v29 = vld [vmem:[%s1542_s1 + $0x38] sm:$0xff] }
   0x7   :  { %90 = vadd.xlane.f32.xlu0 %v89_v15  ;;  %96 = vadd.xlane.f32.xlu1 %v95_v21  ;;  %v76_v26 = vsel %vm1218_vm1, %v56_v19, 0.0  ;;  %v77_v27 = vsel %vm1218_vm1, %v57_v22, 0.0  ;;  %v59_v30 = vld [vmem:[%s1543_s2 + $0x38] sm:$0xff]  ;;  %v44_v31 = vld [vmem:[%s1542_s1 + $0x40] sm:$0xff]  ;;  %v378_v34 = vld [vmem:[%s1547_s6 + $0x8] sm:$0xff]  ;;  %v78_v36 = vsel %vm1218_vm1, %v58_v28, 0.0 }
   0x8   :  { %884 = vmatmul.mubr.msk.f32.gmra.mrb[2].mxu0 %vm88_vm0, %v39_v7  ;;  %v101_v32 = vsel %vm88_vm0, %v76_v26, 0.0  ;;  %v377_v33 = vld [vmem:[%s1547_s6] sm:$0xff]  ;;  %v104_v35 = vsel %vm88_vm0, %v77_v27, 0.0  ;;  %v379_v38 = vld [vmem:[%s1547_s6 + $0x10] sm:$0xff]  ;;  %v380_v39 = vld [vmem:[%s1547_s6 + $0x18] sm:$0xff]  ;;  %v79_v41 = vsel %vm1218_vm1, %v59_v30, 0.0 }
   0x9   :  { %886 = vmatprep.mubr.msk.f32.mxu0 %vm88_vm0, %v40_v9  ;;  %v1016_v37 = vpack.c.bf16 %v378_v34, %v377_v33  ;;  %v45_v40 = vld [vmem:[%s1542_s1 + $0x48] sm:$0xff]  ;;  %v60_v42 = vld [vmem:[%s1543_s2 + $0x40] sm:$0xff]  ;;  %v1020_v43 = vpack.c.bf16 %v380_v39, %v379_v38  ;;  %v46_v47 = vld [vmem:[%s1542_s1 + $0x50] sm:$0xff]  ;;  %v107_v48 = vsel %vm88_vm0, %v78_v36, 0.0 }
   0xa   :  { %v61_v44 = vld [vmem:[%s1543_s2 + $0x48] sm:$0xff]  ;;  %v381_v45 = vld [vmem:[%s1547_s6 + $0x20] sm:$0xff] }
   0xb   :  { %93 = vadd.xlane.f32.xlu0 %v92_v24  ;;  %99 = vadd.xlane.f32.xlu1 %v98_v25  ;;  %v382_v46 = vld [vmem:[%s1547_s6 + $0x28] sm:$0xff] }
   0xc   :  { %887 = vmatmul.mubr.msk.f32.gmra.mrb[4].mxu0 %vm88_vm0, %v41_v20  ;;  %1017 = vmatprep.subr.bf16.mxu1 %v1016_v37 }
   0xd   :  { %889 = vmatprep.mubr.msk.f32.mxu0 %vm88_vm0, %v42_v23 }
   0xf   :  { %102 = vadd.xlane.f32.xlu0 %v101_v32  ;;  %105 = vadd.xlane.f32.xlu1 %v104_v35 }
  0x10   :  { %890 = vmatmul.mubr.msk.f32.gmra.mrb[6].mxu0 %vm88_vm0, %v43_v29 }
  0x11   :  { %892 = vmatprep.mubr.msk.f32.mxu0 %vm88_vm0, %v44_v31 }
  0x12   :  { %16 = vsyncpa [#allocation5], 0  ;;  %v110_v49 = vsel %vm88_vm0, %v79_v41, 0.0  ;;  %v80_v50 = vsel %vm1218_vm1, %v60_v42, 0.0  ;;  %1019 = vmatpush3.bf16.msra.mxu1 %v1016_v37  ;;  %v47_v51 = vld [vmem:[%s1542_s1 + $0x58] sm:$0xff]  ;;  %v81_v52 = vsel %vm1218_vm1, %v61_v44, 0.0  ;;  %v1024_v54 = vpack.c.bf16 %v382_v46, %v381_v45 }
  0x13   :  { %v62_v53 = vld [vmem:[%s1543_s2 + $0x50] sm:$0xff]  ;;  %1021 = vmatprep.subr.bf16.mxu1 %v1020_v43  ;;  %108 = vadd.xlane.f32.xlu0 %v107_v48  ;;  %v63_v55 = vld [vmem:[%s1543_s2 + $0x58] sm:$0xff]  ;;  %v48_v58 = vld [vmem:[%s1542_s1 + $0x60] sm:$0xff]  ;;  %v113_v59 = vsel %vm88_vm0, %v80_v50, 0.0  ;;  %v116_v60 = vsel %vm88_vm0, %v81_v52, 0.0 }
  0x14   :  { %893 = vmatmul.mubr.msk.f32.gmra.mrb[8].mxu0 %vm88_vm0, %v45_v40  ;;  %v383_v56 = vld [vmem:[%s1547_s6 + $0x30] sm:$0xff]  ;;  %v384_v57 = vld [vmem:[%s1547_s6 + $0x38] sm:$0xff]  ;;  %111 = vadd.xlane.f32.xlu1 %v110_v49  ;;  %v82_v61 = vsel %vm1218_vm1, %v62_v53, 0.0  ;;  %v49_v62 = vld [vmem:[%s1542_s1 + $0x68] sm:$0xff]  ;;  %v83_v63 = vsel %vm1218_vm1, %v63_v55, 0.0 }
  0x15   :  { %895 = vmatprep.mubr.msk.f32.mxu0 %vm88_vm0, %v46_v47  ;;  %v64_v0 = vld [vmem:[%s1543_s2 + $0x60] sm:$0xff]  ;;  %v1028_v1 = vpack.c.bf16 %v384_v57, %v383_v56  ;;  %v65_v2 = vld [vmem:[%s1543_s2 + $0x68] sm:$0xff]  ;;  %v50_v5 = vld [vmem:[%s1542_s1 + $0x70] sm:$0xff]  ;;  %v119_v6 = vsel %vm88_vm0, %v82_v61, 0.0  ;;  %v122_v7 = vsel %vm88_vm0, %v83_v63, 0.0 }
  0x16   :  { %1023 = vmatpush3.bf16.msra.mxu1 %v1020_v43  ;;  %v385_v3 = vld [vmem:[%s1547_s6 + $0x40] sm:$0xff]  ;;  %v386_v4 = vld [vmem:[%s1547_s6 + $0x48] sm:$0xff]  ;;  %v84_v9 = vsel %vm1218_vm1, %v64_v0, 0.0  ;;  %v51_v10 = vld [vmem:[%s1542_s1 + $0x78] sm:$0xff]  ;;  %v85_v11 = vsel %vm1218_vm1, %v65_v2, 0.0 }
  0x17   :  { %1025 = vmatprep.subr.bf16.mxu1 %v1024_v54  ;;  %114 = vadd.xlane.f32.xlu0 %v113_v59  ;;  %v66_v12 = vld [vmem:[%s1543_s2 + $0x70] sm:$0xff]  ;;  %v1032_v13 = vpack.c.bf16 %v386_v4, %v385_v3  ;;  %v67_v14 = vld [vmem:[%s1543_s2 + $0x78] sm:$0xff]  ;;  %v125_v17 = vsel %vm88_vm0, %v84_v9, 0.0  ;;  %v128_v18 = vsel %vm88_vm0, %v85_v11, 0.0  ;;  %v389_v24 = vld [vmem:[%s1547_s6 + $0x60] sm:$0xff] }
  0x18   :  { %896 = vmatmul.mubr.msk.f32.gmra.mrb[10].mxu0 %vm88_vm0, %v47_v51  ;;  %117 = vadd.xlane.f32.xlu1 %v116_v60  ;;  %v387_v15 = vld [vmem:[%s1547_s6 + $0x50] sm:$0xff]  ;;  %v388_v16 = vld [vmem:[%s1547_s6 + $0x58] sm:$0xff]  ;;  %v86_v19 = vsel %vm1218_vm1, %v66_v12, 0.0  ;;  %v87_v20 = vsel %vm1218_vm1, %v67_v14, 0.0  ;;  %v390_v8 = vld [vmem:[%s1547_s6 + $0x68] sm:$0xff] }
  0x19   :  { %898 = vmatprep.mubr.msk.f32.mxu0 %vm88_vm0, %v48_v58  ;;  %v1036_v21 = vpack.c.bf16 %v388_v16, %v387_v15  ;;  %v131_v22 = vsel %vm88_vm0, %v86_v19, 0.0  ;;  %v134_v23 = vsel %vm88_vm0, %v87_v20, 0.0  ;;  %v1040_v25 = vpack.c.bf16 %v390_v8, %v389_v24  ;;  %v391_v26 = vld [vmem:[%s1547_s6 + $0x70] sm:$0xff]  ;;  %v392_v27 = vld [vmem:[%s1547_s6 + $0x78] sm:$0xff]  ;;  %v577_v29 = vld [vmem:[%s1549_s8] sm:$0xff] }
  0x1a   :  { %1027 = vmatpush3.bf16.msra.mxu1 %v1024_v54  ;;  %v1044_v28 = vpack.c.bf16 %v392_v27, %v391_v26  ;;  %v578_v30 = vld [vmem:[%s1549_s8 + $0x8] sm:$0xff]  ;;  %v579_v31 = vld [vmem:[%s1549_s8 + $0x10] sm:$0xff]  ;;  %v580_v33 = vld [vmem:[%s1549_s8 + $0x18] sm:$0xff] }
  0x1b   :  { %1029 = vmatprep.subr.bf16.mxu1 %v1028_v1  ;;  %120 = vadd.xlane.f32.xlu0 %v119_v6  ;;  %v1048_v32 = vpack.c.bf16 %v578_v30, %v577_v29  ;;  %v1052_v34 = vpack.c.bf16 %v580_v33, %v579_v31  ;;  %v581_v35 = vld [vmem:[%s1549_s8 + $0x20] sm:$0xff]  ;;  %v582_v36 = vld [vmem:[%s1549_s8 + $0x28] sm:$0xff]  ;;  %v583_v38 = vld [vmem:[%s1549_s8 + $0x30] sm:$0xff] }
  0x1c   :  { %899 = vmatmul.mubr.msk.f32.gmra.mrb[12].mxu0 %vm88_vm0, %v49_v62  ;;  %123 = vadd.xlane.f32.xlu1 %v122_v7  ;;  %v1056_v37 = vpack.c.bf16 %v582_v36, %v581_v35  ;;  %v584_v39 = vld [vmem:[%s1549_s8 + $0x38] sm:$0xff]  ;;  %v585_v41 = vld [vmem:[%s1549_s8 + $0x40] sm:$0xff]  ;;  %v586_v42 = vld [vmem:[%s1549_s8 + $0x48] sm:$0xff] }
  0x1d   :  { %901 = vmatprep.mubr.msk.f32.mxu0 %vm88_vm0, %v50_v5  ;;  %1049 = vmatprep.subr.bf16.mxu0 %v1048_v32  ;;  %v1060_v40 = vpack.c.bf16 %v584_v39, %v583_v38  ;;  %v1064_v43 = vpack.c.bf16 %v586_v42, %v585_v41  ;;  %v1448_v50 = vld [vmem:[%s1545_s4] ss:$0 sm:$0xff] }
  0x1e   :  { %1031 = vmatpush3.bf16.msra.mxu1 %v1028_v1  ;;  %1051 = vmatpush3.bf16.msra.mxu0 %v1048_v32  ;;  %v1455_v55 = vld [vmem:[%s1546_s5] ss:$0 sm:$0xff] }
  0x1f   :  { %1033 = vmatprep.subr.bf16.mxu1 %v1032_v13  ;;  %126 = vadd.xlane.f32.xlu0 %v125_v17 }
  0x20   :  { %902 = vmatmul.mubr.msk.f32.gmra.mrb[14].mxu0 %vm88_vm0, %v51_v10  ;;  %129 = vadd.xlane.f32.xlu1 %v128_v18 }
  0x21   :  { %1053 = vmatprep.subr.bf16.mxu0 %v1052_v34 }
  0x22   :  { %1035 = vmatpush3.bf16.msra.mxu1 %v1032_v13  ;;  %1055 = vmatpush3.bf16.msra.mxu0 %v1052_v34 }
  0x23   :  { %1037 = vmatprep.subr.bf16.mxu1 %v1036_v21  ;;  %132 = vadd.xlane.f32.xlu0 %v131_v22 }
  0x24   :  { %135 = vadd.xlane.f32.xlu1 %v134_v23  ;;  %1057 = vmatprep.subr.bf16.mxu0 %v1056_v37 }
  0x26   :  { %1039 = vmatpush3.bf16.msra.mxu1 %v1036_v21  ;;  %1059 = vmatpush3.bf16.msra.mxu0 %v1056_v37 }
  0x27   :  { %1041 = vmatprep.subr.bf16.mxu1 %v1040_v25  ;;  %1061 = vmatprep.subr.bf16.mxu0 %v1060_v40 }
  0x2a   :  { %1043 = vmatpush3.bf16.msra.mxu1 %v1040_v25  ;;  %1063 = vmatpush3.bf16.msra.mxu0 %v1060_v40 }
  0x2b   :  { %1045 = vmatprep.subr.bf16.mxu1 %v1044_v28  ;;  %1065 = vmatprep.subr.bf16.mxu0 %v1064_v43 }
  0x2e   :  { %1047 = vmatpush3.bf16.msra.mxu1 %v1044_v28  ;;  %1067 = vmatpush3.bf16.msra.mxu0 %v1064_v43 }
  0x94   :  { %v97_v44 = vpop.xlane.xlu1 %96  ;;  %v91_v45 = vpop.xlane.xlu0 %90 }
  0x95   :  { %v146_v54 = vmul.f32 %v1448_v50, %v91_v45  ;;  %v148_v62 = vmul.f32 %v1448_v50, %v97_v44 }
  0x98   :  { %v100_v46 = vpop.xlane.xlu1 %99  ;;  %v94_v47 = vpop.xlane.xlu0 %93 }
  0x99   :  { %v147_v51 = vmul.f32 %v1448_v50, %v94_v47  ;;  %v149_v59 = vmul.f32 %v1448_v50, %v100_v46 }
  0x9c   :  { %v106_v48 = vpop.xlane.xlu1 %105  ;;  %v103_v49 = vpop.xlane.xlu0 %102 }
  0x9d   :  { %v151_v4 = vmul.f32 %v1448_v50, %v106_v48  ;;  %v150_v7 = vmul.f32 %v1448_v50, %v103_v49 }
  0xa0   :  { %v109_v53 = vpop.xlane.xlu0 %108 }
  0xa1   :  { %v112_v52 = vpop.xlane.xlu1 %111  ;;  %v152_v19 = vmul.f32 %v1448_v50, %v109_v53 }
  0xa2   :  { %v153_v16 = vmul.f32 %v1448_v50, %v112_v52 }
  0xa4   :  { %v115_v5 = vpop.xlane.xlu0 %114 }
  0xa5   :  { %v118_v1 = vpop.xlane.xlu1 %117  ;;  %v154_v30 = vmul.f32 %v1448_v50, %v115_v5 }
  0xa6   :  { %v155_v27 = vmul.f32 %v1448_v50, %v118_v1 }
  0xa8   :  { %v121_v23 = vpop.xlane.xlu0 %120 }
  0xa9   :  { %v124_v20 = vpop.xlane.xlu1 %123  ;;  %v156_v42 = vmul.f32 %v1448_v50, %v121_v23 }
  0xaa   :  { %v157_v38 = vmul.f32 %v1448_v50, %v124_v20 }
  0xac   :  { %v127_v39 = vpop.xlane.xlu0 %126 }
  0xad   :  { %v130_v35 = vpop.xlane.xlu1 %129  ;;  %v158_v53 = vmul.f32 %v1448_v50, %v127_v39 }
  0xae   :  { %v159_v49 = vmul.f32 %v1448_v50, %v130_v35 }
  0xd7   :  { %v882_v56 = vpop.f32.mrb[0].mxu0 }
  0xd8   :  { %v282_v57 = vadd.f32 %v882_v56, %v147_v51  ;;  %v276_v58 = vpop.f32.mrb[1].mxu0 }
  0xd9   :  { %v277_v60 = vadd.f32 %v276_v58, %v146_v54  ;;  %v136_v54 = vpop.xlane.xlu1 %135  ;;  %v133_v58 = vpop.xlane.xlu0 %132 }
  0xda   :  { %v362_v61 = vadd.f32 %v1455_v55, %v282_v57 }
  0xdb   :  { %v885_v63 = vpop.f32.mrb[2].mxu0  ;;  %v361_v0 = vadd.f32 %v1455_v55, %v277_v60 }
  0xdc   :  { %v292_v2 = vadd.f32 %v885_v63, %v149_v59  ;;  %v286_v3 = vpop.f32.mrb[3].mxu0  ;;  %v395_v10 = vmax.f32 %v362_v61, 0.0  ;;  %v161_v63 = vmul.f32 %v1448_v50, %v136_v54 }
  0xdd   :  { %v287_v6 = vadd.f32 %v286_v3, %v148_v62  ;;  %v394_v9 = vmax.f32 %v361_v0, 0.0 }
  0xde   :  { %v364_v11 = vadd.f32 %v1455_v55, %v292_v2  ;;  %v160_v2 = vmul.f32 %v1448_v50, %v133_v58 }
  0xdf   :  { %v363_v12 = vadd.f32 %v1455_v55, %v287_v6  ;;  %v888_v13 = vpop.f32.mrb[4].mxu0  ;;  %936 = vmatprep.mubr.f32.mxu1 %v394_v9 }
  0xe0   :  { %v302_v14 = vadd.f32 %v888_v13, %v151_v4  ;;  %v296_v15 = vpop.f32.mrb[5].mxu0  ;;  %937 = vmatmul.mubr.f32.vlgmr.msra.gmra.mrb[0].mxu1 %v395_v10  ;;  %v397_v21 = vmax.f32 %v364_v11, 0.0 }
  0xe1   :  { %v396_v17 = vmax.f32 %v363_v12, 0.0  ;;  %v297_v18 = vadd.f32 %v296_v15, %v150_v7 }
  0xe2   :  { %v366_v22 = vadd.f32 %v1455_v55, %v302_v14 }
  0xe3   :  { %v365_v24 = vadd.f32 %v1455_v55, %v297_v18  ;;  %v891_v8 = vpop.f32.mrb[6].mxu0  ;;  %939 = vmatprep.mubr.f32.mxu1 %v396_v17  ;;  %v588_v17 = vld [vmem:[%s1549_s8 + $0x58] sm:$0xff] }
  0xe4   :  { %v312_v25 = vadd.f32 %v891_v8, %v153_v16  ;;  %v306_v26 = vpop.f32.mrb[7].mxu0  ;;  %940 = vmatmul.mubr.f32.gmra.mrb[2].mxu1 %v397_v21  ;;  %v399_v31 = vmax.f32 %v366_v22, 0.0  ;;  %v587_v16 = vld [vmem:[%s1549_s8 + $0x50] sm:$0xff]  ;;  %v592_v22 = vld [vmem:[%s1549_s8 + $0x78] sm:$0xff] }
  0xe5   :  { %v398_v28 = vmax.f32 %v365_v24, 0.0  ;;  %v307_v29 = vadd.f32 %v306_v26, %v152_v19  ;;  %v1068_v18 = vpack.c.bf16 %v588_v17, %v587_v16  ;;  %v590_v19 = vld [vmem:[%s1549_s8 + $0x68] sm:$0xff]  ;;  %v591_v21 = vld [vmem:[%s1549_s8 + $0x70] sm:$0xff]  ;;  %v1508_v24 = vld [vmem:[%s1548_s7] ss:$0 sm:$0xff] }
  0xe6   :  { %v368_v32 = vadd.f32 %v1455_v55, %v312_v25  ;;  %v1076_v23 = vpack.c.bf16 %v592_v22, %v591_v21 }
  0xe7   :  { %v367_v33 = vadd.f32 %v1455_v55, %v307_v29  ;;  %v894_v34 = vpop.f32.mrb[8].mxu0  ;;  %942 = vmatprep.mubr.f32.mxu1 %v398_v28  ;;  %1069 = vmatprep.subr.bf16.mxu0 %v1068_v18 }
  0xe8   :  { %v322_v36 = vadd.f32 %v894_v34, %v155_v27  ;;  %v316_v37 = vpop.f32.mrb[9].mxu0  ;;  %943 = vmatmul.mubr.f32.gmra.mrb[4].mxu1 %v399_v31  ;;  %v401_v43 = vmax.f32 %v368_v32, 0.0  ;;  %1071 = vmatpush3.bf16.msra.mxu0 %v1068_v18 }
  0xe9   :  { %v400_v40 = vmax.f32 %v367_v33, 0.0  ;;  %v317_v41 = vadd.f32 %v316_v37, %v154_v30 }
  0xea   :  { %v370_v44 = vadd.f32 %v1455_v55, %v322_v36 }
  0xeb   :  { %v369_v45 = vadd.f32 %v1455_v55, %v317_v41  ;;  %v897_v46 = vpop.f32.mrb[10].mxu0  ;;  %945 = vmatprep.mubr.f32.mxu1 %v400_v40 }
  0xec   :  { %v332_v47 = vadd.f32 %v897_v46, %v157_v38  ;;  %v326_v48 = vpop.f32.mrb[11].mxu0  ;;  %946 = vmatmul.mubr.f32.gmra.mrb[6].mxu1 %v401_v43  ;;  %v403_v56 = vmax.f32 %v370_v44, 0.0 }
  0xed   :  { %v402_v51 = vmax.f32 %v369_v45, 0.0  ;;  %v327_v52 = vadd.f32 %v326_v48, %v156_v42 }
  0xee   :  { %v372_v57 = vadd.f32 %v1455_v55, %v332_v47 }
  0xef   :  { %v371_v59 = vadd.f32 %v1455_v55, %v327_v52  ;;  %v900_v60 = vpop.f32.mrb[12].mxu0  ;;  %948 = vmatprep.mubr.f32.mxu1 %v402_v51 }
  0xf0   :  { %v342_v61 = vadd.f32 %v900_v60, %v159_v49  ;;  %v336_v62 = vpop.f32.mrb[13].mxu0  ;;  %949 = vmatmul.mubr.f32.gmra.mrb[8].mxu1 %v403_v56  ;;  %v405_v3 = vmax.f32 %v372_v57, 0.0 }
  0xf1   :  { %v404_v0 = vmax.f32 %v371_v59, 0.0  ;;  %v337_v1 = vadd.f32 %v336_v62, %v158_v53 }
  0xf2   :  { %v374_v4 = vadd.f32 %v1455_v55, %v342_v61 }
  0xf3   :  { %v373_v5 = vadd.f32 %v1455_v55, %v337_v1  ;;  %v903_v6 = vpop.f32.mrb[14].mxu0  ;;  %951 = vmatprep.mubr.f32.mxu1 %v404_v0 }
  0xf4   :  { %v352_v7 = vadd.f32 %v903_v6, %v161_v63  ;;  %v346_v9 = vpop.f32.mrb[15].mxu0  ;;  %952 = vmatmul.mubr.f32.gmra.mrb[10].mxu1 %v405_v3  ;;  %v407_v12 = vmax.f32 %v374_v4, 0.0 }
  0xf5   :  { %v406_v10 = vmax.f32 %v373_v5, 0.0  ;;  %v347_v11 = vadd.f32 %v346_v9, %v160_v2 }
  0xf6   :  { %v376_v13 = vadd.f32 %v1455_v55, %v352_v7 }
  0xf7   :  { %v375_v14 = vadd.f32 %v1455_v55, %v347_v11  ;;  %954 = vmatprep.mubr.f32.mxu1 %v406_v10  ;;  %v589_v55 = vld [vmem:[%s1549_s8 + $0x60] sm:$0xff] }
  0xf8   :  { %955 = vmatmul.mubr.f32.gmra.mrb[12].mxu1 %v407_v12  ;;  %v409_v15 = vmax.f32 %v376_v13, 0.0  ;;  %v1072_v20 = vpack.c.bf16 %v590_v19, %v589_v55  ;;  %v796_v11 = vld [vmem:[%s1550_s9] ss:$0 sm:$0xff]  ;;  %s1139_s9 = smov [#allocation4]  }
  0xf9   :  { %v408_v50 = vmax.f32 %v375_v14, 0.0  ;;  %s766_s11 = sshll.u32 %s1139_s9, 4  ;;  %s767_s11 = int_to_ptr.vmem [resolvable:$true] %s766_s11 }
  0xfa   :  { %1073 = vmatprep.subr.bf16.mxu0 %v1072_v20  ;;  %s1115_s12 = scalar_lea.vmem %s767_s11, 2048  ;;  %p1120_p1 = scmp.lt.s32.totalorder %s767_s11, %s767_s11 }
  0xfb   :  { %957 = vmatprep.mubr.f32.mxu1 %v408_v50  ;;  %1075 = vmatpush3.bf16.msra.mxu0 %v1072_v20  ;;  %p1116_p0 = scmp.ne.s32.totalorder %s767_s11, %s1115_s12  ;;  %p1121_p2 = scmp.lt.s32.totalorder %s1115_s12, %s1115_s12 }
  0xfc   :  { %958 = vmatmul.mubr.f32.gmra.mrb[14].mxu1 %v409_v15  ;;  %1077 = vmatprep.subr.bf16.mxu0 %v1076_v23 }
  0xfd   :  { %p1122_p3 = por %p1121_p2, %p1120_p1 }
  0xff   :  { %1079 = vmatpush3.bf16.msra.mxu0 %v1076_v23  ;;  %p1123_p4 = pnand %p1122_p3, %p1116_p0 }
 0x1b3   :  { %v938_v8 = vpop.f32.mrb[0].mxu1 }
 0x1b4   :  { %v488_v25 = vadd.f32 %v938_v8, %v1508_v24  ;;  %v482_v26 = vpop.f32.mrb[1].mxu1 }
 0x1b5   :  { %v483_v27 = vadd.f32 %v1508_v24, %v482_v26 }
 0x1b7   :  { %1083 = vtanh.f32 %v483_v27  ;;  %v941_v28 = vpop.f32.mrb[2].mxu1 }
 0x1b8   :  { %1085 = vtanh.f32 %v488_v25  ;;  %v498_v29 = vadd.f32 %v941_v28, %v1508_v24  ;;  %v492_v30 = vpop.f32.mrb[3].mxu1 }
 0x1b9   :  { %v493_v31 = vadd.f32 %v1508_v24, %v492_v30 }
 0x1bb   :  { %1087 = vtanh.f32 %v493_v31  ;;  %v944_v32 = vpop.f32.mrb[4].mxu1 }
 0x1bc   :  { %1089 = vtanh.f32 %v498_v29  ;;  %v508_v33 = vadd.f32 %v944_v32, %v1508_v24  ;;  %v502_v34 = vpop.f32.mrb[5].mxu1 }
 0x1bd   :  { %v503_v35 = vadd.f32 %v1508_v24, %v502_v34 }
 0x1bf   :  { %1091 = vtanh.f32 %v503_v35  ;;  %v947_v36 = vpop.f32.mrb[6].mxu1 }
 0x1c0   :  { %1093 = vtanh.f32 %v508_v33  ;;  %v518_v37 = vadd.f32 %v947_v36, %v1508_v24  ;;  %v512_v38 = vpop.f32.mrb[7].mxu1 }
 0x1c1   :  { %v1084_v39 = vpop.eup %1083  ;;  %v513_v40 = vadd.f32 %v1508_v24, %v512_v38 }
 0x1c2   :  { %v1086_v41 = vpop.eup %1085  ;;  %992 = vmatprep.mubr.f32.mxu0 %v1084_v39 }
 0x1c3   :  { %1095 = vtanh.f32 %v513_v40  ;;  %v950_v42 = vpop.f32.mrb[8].mxu1  ;;  %993 = vmatmul.mubr.f32.vlgmr.msra.gmra.mrb[16].mxu0 %v1086_v41 }
 0x1c4   :  { %1097 = vtanh.f32 %v518_v37  ;;  %v528_v43 = vadd.f32 %v950_v42, %v1508_v24  ;;  %v522_v44 = vpop.f32.mrb[9].mxu1 }
 0x1c5   :  { %v1088_v45 = vpop.eup %1087  ;;  %v523_v46 = vadd.f32 %v1508_v24, %v522_v44 }
 0x1c6   :  { %v1090_v47 = vpop.eup %1089  ;;  %995 = vmatprep.mubr.f32.mxu0 %v1088_v45 }
 0x1c7   :  { %1099 = vtanh.f32 %v523_v46  ;;  %v953_v48 = vpop.f32.mrb[10].mxu1  ;;  %996 = vmatmul.mubr.f32.gmra.mrb[18].mxu0 %v1090_v47 }
 0x1c8   :  { %1101 = vtanh.f32 %v528_v43  ;;  %v538_v49 = vadd.f32 %v953_v48, %v1508_v24  ;;  %v532_v51 = vpop.f32.mrb[11].mxu1 }
 0x1c9   :  { %v1092_v52 = vpop.eup %1091  ;;  %v533_v53 = vadd.f32 %v1508_v24, %v532_v51 }
 0x1ca   :  { %v1094_v54 = vpop.eup %1093  ;;  %998 = vmatprep.mubr.f32.mxu0 %v1092_v52 }
 0x1cb   :  { %1103 = vtanh.f32 %v533_v53  ;;  %v956_v56 = vpop.f32.mrb[12].mxu1  ;;  %999 = vmatmul.mubr.f32.gmra.mrb[20].mxu0 %v1094_v54 }
 0x1cc   :  { %1105 = vtanh.f32 %v538_v49  ;;  %v548_v57 = vadd.f32 %v956_v56, %v1508_v24  ;;  %v542_v58 = vpop.f32.mrb[13].mxu1 }
 0x1cd   :  { %v1096_v59 = vpop.eup %1095  ;;  %v543_v60 = vadd.f32 %v1508_v24, %v542_v58 }
 0x1ce   :  { %v1098_v61 = vpop.eup %1097  ;;  %1001 = vmatprep.mubr.f32.mxu0 %v1096_v59 }
 0x1cf   :  { %1107 = vtanh.f32 %v543_v60  ;;  %v959_v62 = vpop.f32.mrb[14].mxu1  ;;  %1002 = vmatmul.mubr.f32.gmra.mrb[22].mxu0 %v1098_v61 }
 0x1d0   :  { %1109 = vtanh.f32 %v548_v57  ;;  %v558_v63 = vadd.f32 %v959_v62, %v1508_v24  ;;  %v552_v0 = vpop.f32.mrb[15].mxu1 }
 0x1d1   :  { %v1100_v1 = vpop.eup %1099  ;;  %v553_v2 = vadd.f32 %v1508_v24, %v552_v0 }
 0x1d2   :  { %v1102_v3 = vpop.eup %1101  ;;  %1004 = vmatprep.mubr.f32.mxu0 %v1100_v1 }
 0x1d3   :  { %1111 = vtanh.f32 %v553_v2  ;;  %1005 = vmatmul.mubr.f32.gmra.mrb[24].mxu0 %v1102_v3 }
 0x1d4   :  { %1113 = vtanh.f32 %v558_v63 }
 0x1d5   :  { %v1104_v4 = vpop.eup %1103 }
 0x1d6   :  { %v1106_v5 = vpop.eup %1105  ;;  %1007 = vmatprep.mubr.f32.mxu0 %v1104_v4 }
 0x1d7   :  { %1008 = vmatmul.mubr.f32.gmra.mrb[26].mxu0 %v1106_v5 }
 0x1d9   :  { %v1108_v6 = vpop.eup %1107 }
 0x1da   :  { %v1110_v7 = vpop.eup %1109  ;;  %1010 = vmatprep.mubr.f32.mxu0 %v1108_v6 }
 0x1db   :  { %1011 = vmatmul.mubr.f32.gmra.mrb[28].mxu0 %v1110_v7 }
 0x1dd   :  { %v1112_v9 = vpop.eup %1111 }
 0x1de   :  { %v1114_v10 = vpop.eup %1113  ;;  %1013 = vmatprep.mubr.f32.mxu0 %v1112_v9 }
 0x1df   :  { %1014 = vmatmul.mubr.f32.gmra.mrb[30].mxu0 %v1114_v10 }
 0x296   :  { %v994_v12 = vpop.f32.mrb[16].mxu0 }
 0x297   :  { %v672_v13 = vadd.f32 %v994_v12, %v796_v11  ;;  %v666_v14 = vpop.f32.mrb[17].mxu0 }
 0x298   :  { %v667_v50 = vadd.f32 %v796_v11, %v666_v14 }
 0x299   :  { %746 = vst [vmem:[#allocation4 + $0x8] sm:$0xff] %v672_v13 }
 0x29a   :  { %745 = vst [vmem:[#allocation4] sm:$0xff] %v667_v50  ;;  %v997_v15 = vpop.f32.mrb[18].mxu0 }
 0x29b   :  { %v682_v16 = vadd.f32 %v997_v15, %v796_v11  ;;  %v676_v17 = vpop.f32.mrb[19].mxu0 }
 0x29c   :  { %v677_v18 = vadd.f32 %v796_v11, %v676_v17 }
 0x29d   :  { %748 = vst [vmem:[#allocation4 + $0x18] sm:$0xff] %v682_v16 }
 0x29e   :  { %747 = vst [vmem:[#allocation4 + $0x10] sm:$0xff] %v677_v18  ;;  %v1000_v55 = vpop.f32.mrb[20].mxu0 }
 0x29f   :  { %v692_v19 = vadd.f32 %v1000_v55, %v796_v11  ;;  %v686_v20 = vpop.f32.mrb[21].mxu0 }
 0x2a0   :  { %v687_v21 = vadd.f32 %v796_v11, %v686_v20 }
 0x2a1   :  { %750 = vst [vmem:[#allocation4 + $0x28] sm:$0xff] %v692_v19 }
 0x2a2   :  { %749 = vst [vmem:[#allocation4 + $0x20] sm:$0xff] %v687_v21  ;;  %v1003_v22 = vpop.f32.mrb[22].mxu0 }
 0x2a3   :  { %v702_v23 = vadd.f32 %v1003_v22, %v796_v11  ;;  %v696_v24 = vpop.f32.mrb[23].mxu0 }
 0x2a4   :  { %v697_v8 = vadd.f32 %v796_v11, %v696_v24 }
 0x2a5   :  { %752 = vst [vmem:[#allocation4 + $0x38] sm:$0xff] %v702_v23 }
 0x2a6   :  { %751 = vst [vmem:[#allocation4 + $0x30] sm:$0xff] %v697_v8  ;;  %v1006_v25 = vpop.f32.mrb[24].mxu0 }
 0x2a7   :  { %v712_v26 = vadd.f32 %v1006_v25, %v796_v11  ;;  %v706_v27 = vpop.f32.mrb[25].mxu0 }
 0x2a8   :  { %v707_v28 = vadd.f32 %v796_v11, %v706_v27 }
 0x2a9   :  { %754 = vst [vmem:[#allocation4 + $0x48] sm:$0xff] %v712_v26 }
 0x2aa   :  { %753 = vst [vmem:[#allocation4 + $0x40] sm:$0xff] %v707_v28  ;;  %v1009_v29 = vpop.f32.mrb[26].mxu0 }
 0x2ab   :  { %v722_v30 = vadd.f32 %v1009_v29, %v796_v11  ;;  %v716_v31 = vpop.f32.mrb[27].mxu0 }
 0x2ac   :  { %v717_v32 = vadd.f32 %v796_v11, %v716_v31 }
 0x2ad   :  { %756 = vst [vmem:[#allocation4 + $0x58] sm:$0xff] %v722_v30 }
 0x2ae   :  { %755 = vst [vmem:[#allocation4 + $0x50] sm:$0xff] %v717_v32  ;;  %v1012_v33 = vpop.f32.mrb[28].mxu0 }
 0x2af   :  { %v732_v34 = vadd.f32 %v1012_v33, %v796_v11  ;;  %v726_v35 = vpop.f32.mrb[29].mxu0 }
 0x2b0   :  { %v727_v36 = vadd.f32 %v796_v11, %v726_v35 }
 0x2b1   :  { %758 = vst [vmem:[#allocation4 + $0x68] sm:$0xff] %v732_v34 }
 0x2b2   :  { %757 = vst [vmem:[#allocation4 + $0x60] sm:$0xff] %v727_v36  ;;  %v1015_v37 = vpop.f32.mrb[30].mxu0 }
 0x2b3   :  { %v742_v38 = vadd.f32 %v1015_v37, %v796_v11  ;;  %v736_v39 = vpop.f32.mrb[31].mxu0 }
 0x2b4   :  { %v737_v40 = vadd.f32 %v796_v11, %v736_v39 }
 0x2b5   :  { %760 = vst [vmem:[#allocation4 + $0x78] sm:$0xff] %v742_v38 }
 0x2b6   :  { %759 = vst [vmem:[#allocation4 + $0x70] sm:$0xff] %v737_v40 }
 0x2b7   :  { %1126 = shalt.err (!%p1123_p4)
}
 0x2b8   :  { %s1127_s1 = scalar_lea.hbm %s1551_s10, 2048 }
 0x2b9   :  { %p1128_p5 = scmp.ne.s32.totalorder %s1551_s10, %s1127_s1  ;;  %p1131_p6 = scmp.lt.u32.totalorder %s1127_s1, %s1551_s10 }
 0x2bb   :  { %p1133_p7 = pnand %p1131_p6, %p1128_p5 }
 0x2bd   :  { %1136 = shalt.err (!%p1133_p7)
}
 0x2be   :  { %s1140_s18 = smov 128   ;;  %s1141_s19 = smov 8  }
 0x2bf   :  { %772 = dma.vmem_to_hbm [thread:$0]  %s767_s11, 2048, %s1551_s10, [#allocation5], %s1140_s18, %s1140_s18, %s1141_s19  }
 0x2c0   :  { %1137 = dma.done.wait [#allocation5], 2048  }
 0x2c1   :  { %1138 = vsyncadd [#allocation5], 4294965248 }
 0x2c2   :  { %776 = vsyncpa [#allocation5], 1 }

</bundles_post_ra>
